<compile_context>
chip_gen: v7x
topology: tpu7x:2x2x1
jax: 0.10.0
libtpu: 0.0.40
codegen_flags: <defaults>
</compile_context>

<pallas_src>
import functools

import jax
import jax.numpy as jnp
from jax import lax
from jax.experimental import pallas as pl
from jax.experimental.pallas import tpu as pltpu

_LANE_WIDTH = 512          # lane-dense slab width (multiple of 128)
_MAX_BLOCK_ROWS = 1024     # 1024 x 512 x 4 B = 2 MiB per tile (4 tile buffers << v7x VMEM)


def _hash32(x):
    # "lowbias32" integer finalizer: good avalanche, cheap VPU ops only.
    x = x ^ (x >> 16)
    x = x * jnp.uint32(0x7FEB352D)
    x = x ^ (x >> 15)
    x = x * jnp.uint32(0x846CA68B)
    x = x ^ (x >> 16)
    return x


def _bits_to_uniform(bits):
    # Mantissa trick: stuff 23 random bits into a [1, 2) float and subtract 1.
    f = lax.bitcast_convert_type((bits >> 9) | jnp.uint32(0x3F800000), jnp.float32)
    return f - jnp.float32(1.0)


def _gaussian_noise_kernel(seed_ref, x_ref, o_ref, *, mean, std):
    tr, w = x_ref.shape          # static block shape
    wh = w // 2

    pid = pl.program_id(0)
    seed_u = seed_ref[0].astype(jnp.uint32)

    # One counter per Box-Muller pair; each pair feeds two output elements
    # (left half gets the cos branch, right half gets the sin branch).
    row = lax.broadcasted_iota(jnp.uint32, (tr, wh), 0)
    col = lax.broadcasted_iota(jnp.uint32, (tr, wh), 1)
    g_row = (pid * tr).astype(jnp.uint32) + row
    pair = g_row * jnp.uint32(wh) + col

    mixed = pair * jnp.uint32(0x9E3779B1) + seed_u * jnp.uint32(0x85EBCA77)
    bits1 = _hash32(mixed)
    bits2 = _hash32(mixed ^ jnp.uint32(0x68E31DA4))

    u1 = jnp.float32(1.0) - _bits_to_uniform(bits1)   # (0, 1]  -> log is safe
    u2 = _bits_to_uniform(bits2)                       # [0, 1)

    r = jnp.sqrt(jnp.float32(-2.0) * jnp.log(u1))
    theta = jnp.float32(2.0 * jnp.pi) * u2
    z1 = r * jnp.cos(theta)
    z2 = r * jnp.sin(theta)

    x = x_ref[...].astype(jnp.float32)
    m = jnp.float32(mean)
    s = jnp.float32(std)
    o_ref[:, 0:wh] = (x[:, 0:wh] + (m + s * z1)).astype(o_ref.dtype)
    o_ref[:, wh:w] = (x[:, wh:w] + (m + s * z2)).astype(o_ref.dtype)


def gaussian_noise_layer(x, *, seed=0, mean=0.0, std=0.2, training=True):
    """Forward pass of GaussianNoiseLayer.

    training=True : returns x + noise, noise ~ N(mean, std), same shape/dtype as x.
    training=False: identity (matches the PyTorch eval-mode branch).
    Callers should thread a fresh `seed` every step for new noise.
    """
    if not training:
        return x

    orig_shape = x.shape
    orig_dtype = x.dtype

    flat = x.reshape(-1)
    total = flat.shape[0]

    # Lay out as a lane-dense (rows, 512) slab. Only pad the tail when the
    # element count is not already a multiple of the lane width (common conv
    # activation sizes need no pad at all).
    w = _LANE_WIDTH
    padded = pl.cdiv(total, w) * w
    if padded != total:
        flat = jnp.pad(flat, (0, padded - total))
    rows = padded // w
    x2d = flat.reshape(rows, w)

    block_rows = min(_MAX_BLOCK_ROWS, rows)
    grid = (pl.cdiv(rows, block_rows),)

    seed_arr = jnp.asarray([seed], dtype=jnp.int32)
    kernel = functools.partial(_gaussian_noise_kernel, mean=float(mean), std=float(std))

    out2d = pl.pallas_call(
        kernel,
        out_shape=jax.ShapeDtypeStruct((rows, w), orig_dtype),
        grid=grid,
        in_specs=[
            pl.BlockSpec(memory_space=pltpu.SMEM),                 # seed scalar
            pl.BlockSpec((block_rows, w), lambda i: (i, 0)),       # x tile
        ],
        out_specs=pl.BlockSpec((block_rows, w), lambda i: (i, 0)),
        compiler_params=pltpu.CompilerParams(
            dimension_semantics=("parallel",),
            vmem_limit_bytes=32 * 1024 * 1024,
        ),
    )(seed_arr, x2d)

    out = out2d.reshape(-1)
    if padded != total:
        out = out[:total]
    return out.reshape(orig_shape)


if __name__ == "__main__":
    key = jax.random.PRNGKey(0)
    x = jax.random.normal(key, (2, 4, 16, 16), dtype=jnp.float32)  # NCHW

    mean, std = 0.0, 0.2

    # Training mode: x + Gaussian noise.
    y = gaussian_noise_layer(x, seed=123, mean=mean, std=std, training=True)
    y = jax.block_until_ready(y)

    # Eval mode: identity.
    y_eval = gaussian_noise_layer(x, training=False)
    y_eval = jax.block_until_ready(y_eval)

    assert y.shape == x.shape and y.dtype == x.dtype
    assert bool(jnp.all(y_eval == x))

    # Sanity: recovered noise statistics should be roughly N(mean, std).
    noise = y - x
    emp_mean = float(jnp.mean(noise))
    emp_std = float(jnp.std(noise))
    assert abs(emp_mean - mean) < 0.05, emp_mean
    assert abs(emp_std - std) < 0.05, emp_std

    print("KERNEL_OK")
</pallas_src>

<mosaic_0001>
module attributes {stable_mosaic.version = 11 : i64} {
  func.func @_gaussian_noise_kernel(%arg0: i32, %arg1: memref<1xi32, #tpu.memory_space<smem>>, %arg2: memref<4x512xf32, #tpu.memory_space<vmem>>, %arg3: memref<4x512xf32, #tpu.memory_space<vmem>>) attributes {dimension_semantics = [#tpu.dimension_semantics<parallel>], iteration_bounds = array<i64: 1>, scalar_prefetch = 0 : i64, scratch_operands = 0 : i64, tpu.core_type = #tpu.core_type<tc>, window_params = [{transform_indices = @transform_0, window_bounds = array<i64: 1>}, {transform_indices = @transform_1, window_bounds = array<i64: 4, 512>}, {transform_indices = @transform_2, window_bounds = array<i64: 4, 512>}]} {
    %c0 = arith.constant 0 : index
    %0 = memref.load %arg1[%c0] : memref<1xi32, #tpu.memory_space<smem>>
    %1 = tpu.iota {dimensions = array<i32: 0>} : vector<4x256xi32>
    %2 = tpu.iota {dimensions = array<i32: 1>} : vector<4x256xi32>
    %c4_i32 = arith.constant 4 : i32
    %3 = arith.muli %arg0, %c4_i32 : i32
    %4 = vector.broadcast %3 : i32 to vector<4x256xi32>
    %5 = arith.addi %4, %1 : vector<4x256xi32>
    %c256_i32 = arith.constant 256 : i32
    %6 = vector.broadcast %c256_i32 : i32 to vector<4x256xi32>
    %7 = arith.muli %5, %6 : vector<4x256xi32>
    %8 = arith.addi %7, %2 : vector<4x256xi32>
    %c-1640531535_i32 = arith.constant -1640531535 : i32
    %9 = vector.broadcast %c-1640531535_i32 : i32 to vector<4x256xi32>
    %10 = arith.muli %8, %9 : vector<4x256xi32>
    %c-2048144777_i32 = arith.constant -2048144777 : i32
    %11 = arith.muli %0, %c-2048144777_i32 : i32
    %12 = vector.broadcast %11 : i32 to vector<4x256xi32>
    %13 = arith.addi %10, %12 : vector<4x256xi32>
    %c16_i32 = arith.constant 16 : i32
    %14 = vector.broadcast %c16_i32 : i32 to vector<4x256xi32>
    %15 = arith.shrui %13, %14 : vector<4x256xi32>
    %16 = arith.xori %13, %15 : vector<4x256xi32>
    %c2146121005_i32 = arith.constant 2146121005 : i32
    %17 = vector.broadcast %c2146121005_i32 : i32 to vector<4x256xi32>
    %18 = arith.muli %16, %17 : vector<4x256xi32>
    %c15_i32 = arith.constant 15 : i32
    %19 = vector.broadcast %c15_i32 : i32 to vector<4x256xi32>
    %20 = arith.shrui %18, %19 : vector<4x256xi32>
    %21 = arith.xori %18, %20 : vector<4x256xi32>
    %c-2073254261_i32 = arith.constant -2073254261 : i32
    %22 = vector.broadcast %c-2073254261_i32 : i32 to vector<4x256xi32>
    %23 = arith.muli %21, %22 : vector<4x256xi32>
    %c16_i32_0 = arith.constant 16 : i32
    %24 = vector.broadcast %c16_i32_0 : i32 to vector<4x256xi32>
    %25 = arith.shrui %23, %24 : vector<4x256xi32>
    %26 = arith.xori %23, %25 : vector<4x256xi32>
    %c1759714724_i32 = arith.constant 1759714724 : i32
    %27 = vector.broadcast %c1759714724_i32 : i32 to vector<4x256xi32>
    %28 = arith.xori %13, %27 : vector<4x256xi32>
    %c16_i32_1 = arith.constant 16 : i32
    %29 = vector.broadcast %c16_i32_1 : i32 to vector<4x256xi32>
    %30 = arith.shrui %28, %29 : vector<4x256xi32>
    %31 = arith.xori %28, %30 : vector<4x256xi32>
    %c2146121005_i32_2 = arith.constant 2146121005 : i32
    %32 = vector.broadcast %c2146121005_i32_2 : i32 to vector<4x256xi32>
    %33 = arith.muli %31, %32 : vector<4x256xi32>
    %c15_i32_3 = arith.constant 15 : i32
    %34 = vector.broadcast %c15_i32_3 : i32 to vector<4x256xi32>
    %35 = arith.shrui %33, %34 : vector<4x256xi32>
    %36 = arith.xori %33, %35 : vector<4x256xi32>
    %c-2073254261_i32_4 = arith.constant -2073254261 : i32
    %37 = vector.broadcast %c-2073254261_i32_4 : i32 to vector<4x256xi32>
    %38 = arith.muli %36, %37 : vector<4x256xi32>
    %c16_i32_5 = arith.constant 16 : i32
    %39 = vector.broadcast %c16_i32_5 : i32 to vector<4x256xi32>
    %40 = arith.shrui %38, %39 : vector<4x256xi32>
    %41 = arith.xori %38, %40 : vector<4x256xi32>
    %c9_i32 = arith.constant 9 : i32
    %42 = vector.broadcast %c9_i32 : i32 to vector<4x256xi32>
    %43 = arith.shrui %26, %42 : vector<4x256xi32>
    %c1065353216_i32 = arith.constant 1065353216 : i32
    %44 = vector.broadcast %c1065353216_i32 : i32 to vector<4x256xi32>
    %45 = arith.ori %43, %44 : vector<4x256xi32>
    %46 = tpu.bitcast %45 : vector<4x256xi32> -> vector<4x256xf32>
    %cst = arith.constant 1.000000e+00 : f32
    %47 = vector.broadcast %cst : f32 to vector<4x256xf32>
    %48 = arith.subf %46, %47 : vector<4x256xf32>
    %cst_6 = arith.constant 1.000000e+00 : f32
    %49 = vector.broadcast %cst_6 : f32 to vector<4x256xf32>
    %50 = arith.subf %49, %48 : vector<4x256xf32>
    %c9_i32_7 = arith.constant 9 : i32
    %51 = vector.broadcast %c9_i32_7 : i32 to vector<4x256xi32>
    %52 = arith.shrui %41, %51 : vector<4x256xi32>
    %c1065353216_i32_8 = arith.constant 1065353216 : i32
    %53 = vector.broadcast %c1065353216_i32_8 : i32 to vector<4x256xi32>
    %54 = arith.ori %52, %53 : vector<4x256xi32>
    %55 = tpu.bitcast %54 : vector<4x256xi32> -> vector<4x256xf32>
    %cst_9 = arith.constant 1.000000e+00 : f32
    %56 = vector.broadcast %cst_9 : f32 to vector<4x256xf32>
    %57 = arith.subf %55, %56 : vector<4x256xf32>
    %58 = math.log %50 : vector<4x256xf32>
    %cst_10 = arith.constant -2.000000e+00 : f32
    %59 = vector.broadcast %cst_10 : f32 to vector<4x256xf32>
    %60 = arith.mulf %59, %58 : vector<4x256xf32>
    %61 = math.sqrt %60 : vector<4x256xf32>
    %cst_11 = arith.constant 6.28318548 : f32
    %62 = vector.broadcast %cst_11 : f32 to vector<4x256xf32>
    %63 = arith.mulf %62, %57 : vector<4x256xf32>
    %64 = math.cos %63 : vector<4x256xf32>
    %65 = arith.mulf %61, %64 : vector<4x256xf32>
    %66 = math.sin %63 : vector<4x256xf32>
    %67 = arith.mulf %61, %66 : vector<4x256xf32>
    %c0_12 = arith.constant 0 : index
    %c0_13 = arith.constant 0 : index
    %68 = vector.load %arg2[%c0_12, %c0_13] : memref<4x512xf32, #tpu.memory_space<vmem>>, vector<4x512xf32>
    %69 = vector.extract_strided_slice %68 {offsets = [0, 0], sizes = [4, 256], strides = [1, 1]} : vector<4x512xf32> to vector<4x256xf32>
    %cst_14 = arith.constant 2.000000e-01 : f32
    %70 = vector.broadcast %cst_14 : f32 to vector<4x256xf32>
    %71 = arith.mulf %70, %65 : vector<4x256xf32>
    %cst_15 = arith.constant 0.000000e+00 : f32
    %72 = vector.broadcast %cst_15 : f32 to vector<4x256xf32>
    %73 = arith.addf %72, %71 : vector<4x256xf32>
    %74 = arith.addf %69, %73 : vector<4x256xf32>
    %c0_16 = arith.constant 0 : index
    %c0_17 = arith.constant 0 : index
    %75 = vector.load %arg3[%c0_16, %c0_17] : memref<4x512xf32, #tpu.memory_space<vmem>>, vector<4x256xf32>
    tpu.vector_store %arg3[%c0_16, %c0_17], %74 {strides = array<i32>} : memref<4x512xf32, #tpu.memory_space<vmem>>, vector<4x256xf32>,
    %76 = vector.extract_strided_slice %68 {offsets = [0, 256], sizes = [4, 256], strides = [1, 1]} : vector<4x512xf32> to vector<4x256xf32>
    %cst_18 = arith.constant 2.000000e-01 : f32
    %77 = vector.broadcast %cst_18 : f32 to vector<4x256xf32>
    %78 = arith.mulf %77, %67 : vector<4x256xf32>
    %cst_19 = arith.constant 0.000000e+00 : f32
    %79 = vector.broadcast %cst_19 : f32 to vector<4x256xf32>
    %80 = arith.addf %79, %78 : vector<4x256xf32>
    %81 = arith.addf %76, %80 : vector<4x256xf32>
    %c0_20 = arith.constant 0 : index
    %c256 = arith.constant 256 : index
    %82 = vector.load %arg3[%c0_20, %c256] : memref<4x512xf32, #tpu.memory_space<vmem>>, vector<4x256xf32>
    tpu.vector_store %arg3[%c0_20, %c256], %81 {strides = array<i32>} : memref<4x512xf32, #tpu.memory_space<vmem>>, vector<4x256xf32>,
    return
  }
  func.func @transform_0(%arg0: i32) -> i32 {
    %c0_i32 = arith.constant 0 : i32
    %c0_i32_0 = arith.constant 0 : i32
    return %c0_i32 : i32
  }
  func.func @transform_1(%arg0: i32) -> (i32, i32) {
    %c0_i32 = arith.constant 0 : i32
    %c0_i32_0 = arith.constant 0 : i32
    return %arg0, %c0_i32 : i32, i32
  }
  func.func @transform_2(%arg0: i32) -> (i32, i32) {
    %c0_i32 = arith.constant 0 : i32
    %c0_i32_0 = arith.constant 0 : i32
    return %arg0, %c0_i32 : i32, i32
  }
}

</mosaic_0001>

<bundles_post_ra>
// kernel: tpu_custom_call.1
= control target key start
LH: loop header
LB: loop body
LE: loop exit
PB: predicated region body
PF: predicated region fallthrough
CT: control target
= control target key end

     0   :  { %8 = vsyncpa [#allocation4], 0  ;;  %s816_s0 = inlined_call_operand.<no memory space> [shape: s32[1], index: 0, kind: input, shape index: {}]   ;;  %s817_s1 = inlined_call_operand.hbm [shape: f32[4,512], index: 1, kind: input, shape index: {}]   ;;  %s818_s2 = inlined_call_operand.hbm [shape: f32[4,512], index: 2, kind: output, shape index: {}]  }
   0x1   :  { %9 = vsyncpa [#allocation5], 0  ;;  %s672_s9 = smov [#allocation3]   ;;  %s624_s13 = scalar_lea.hbm %s817_s1, 256 }
   0x2   :  { %s18_s10 = sshll.u32 %s672_s9, 4  ;;  %p625_p0 = scmp.ne.s32.totalorder %s817_s1, %s624_s13  ;;  %s19_s10 = int_to_ptr.vmem [resolvable:$true] %s18_s10 }
   0x3   :  { %p628_p1 = scmp.lt.u32.totalorder %s624_s13, %s817_s1 }
   0x5   :  { %p630_p2 = pnand %p628_p1, %p625_p0 }
   0x7   :  { %633 = shalt.err (!%p630_p2)
}
   0x8   :  { %s634_s18 = scalar_lea.vmem %s19_s10, 256  ;;  %p639_p4 = scmp.lt.s32.totalorder %s19_s10, %s19_s10 }
   0x9   :  { %p635_p3 = scmp.ne.s32.totalorder %s19_s10, %s634_s18  ;;  %p640_p5 = scmp.lt.s32.totalorder %s634_s18, %s634_s18 }
   0xb   :  { %p641_p6 = por %p640_p5, %p639_p4 }
   0xd   :  { %p642_p7 = pnand %p641_p6, %p635_p3 }
   0xf   :  { %645 = shalt.err (!%p642_p7)
}
  0x10   :  { %21 = dma.hbm_to_vmem [thread:$0]  %s817_s1, 256, %s19_s10, [#allocation4]  }
  0x11   :  { %668 = dma.done.wait [#allocation4], 256  }
  0x12   :  { %669 = vsyncadd [#allocation4], 4294967040  ;;  %v26_v0 = vlaneseq  ;;  %s39_s23 = smul.u32 2246822519, %s816_s0  ;;  %s679_s0 = smov [#allocation6]  }
  0x13   :  { %s563_s1 = sshll.u32 %s679_s0, 4  ;;  %s564_s1 = int_to_ptr.vmem [resolvable:$true] %s563_s1 }
  0x14   :  { %v27_v1 = vshrl.u32 %v26_v0, 7  ;;  %v29_v2 = vand.u32 127, %v26_v0  ;;  %v40_v7 = vstv %s39_s23  ;;  %s646_s24 = scalar_lea.vmem %s564_s1, 256  ;;  %p651_p9 = scmp.lt.s32.totalorder %s564_s1, %s564_s1 }
  0x15   :  { %p647_p8 = scmp.ne.s32.totalorder %s564_s1, %s646_s24  ;;  %p652_p10 = scmp.lt.s32.totalorder %s646_s24, %s646_s24 }
  0x16   :  { %v30_v3 = vadd.s32 128, %v29_v2  ;;  %v34_v4 = vmul.u32 256, %v27_v1  ;;  %v673_v1 = vmov 683565275  }
  0x17   :  { %p653_p11 = por %p652_p10, %p651_p9 }
  0x18   :  { %v35_v5 = vadd.s32 %v34_v4, %v29_v2  ;;  %v36_v6 = vadd.s32 %v34_v4, %v30_v3  ;;  %v674_v3 = vmov 2475754826  }
  0x19   :  { %p654_p12 = pnand %p653_p11, %p647_p8 }
  0x1a   :  { %v37_v8 = vmul.u32 2654435761, %v35_v5  ;;  %v38_v9 = vmul.u32 2654435761, %v36_v6 }
  0x1c   :  { %v41_v10 = vadd.s32 %v40_v7, %v37_v8  ;;  %v42_v11 = vadd.s32 %v40_v7, %v38_v9 }
  0x1e   :  { %v59_v12 = vxor.u32 1759714724, %v41_v10  ;;  %v60_v13 = vxor.u32 1759714724, %v42_v11  ;;  %v43_v28 = vshrl.u32 %v41_v10, 16  ;;  %v44_v38 = vshrl.u32 %v42_v11, 16 }
  0x20   :  { %v61_v14 = vshrl.u32 %v59_v12, 16  ;;  %v62_v15 = vshrl.u32 %v60_v13, 16  ;;  %v45_v33 = vxor.u32 %v43_v28, %v41_v10  ;;  %v46_v43 = vxor.u32 %v44_v38, %v42_v11 }
  0x21   :  { %v675_v11 = vmov 2131351028  }
  0x22   :  { %v63_v16 = vxor.u32 %v61_v14, %v59_v12  ;;  %v64_v17 = vxor.u32 %v62_v15, %v60_v13  ;;  %v47_v39 = vmul.u32 2146121005, %v45_v33  ;;  %v48_v50 = vmul.u32 2146121005, %v46_v43 }
  0x23   :  { %v676_v14 = vmov 2102212464  }
  0x24   :  { %v65_v18 = vmul.u32 2146121005, %v63_v16  ;;  %v66_v19 = vmul.u32 2146121005, %v64_v17  ;;  %v49_v45 = vshrl.u32 %v47_v39, 15  ;;  %v50_v56 = vshrl.u32 %v48_v50, 15 }
  0x25   :  { %v677_v17 = vmov 920167782  }
  0x26   :  { %v67_v20 = vshrl.u32 %v65_v18, 15  ;;  %v68_v21 = vshrl.u32 %v66_v19, 15  ;;  %v51_v52 = vxor.u32 %v49_v45, %v47_v39  ;;  %v719_v63 = vxor.u32 %v50_v56, %v48_v50 }
  0x28   :  { %v69_v22 = vxor.u32 %v67_v20, %v65_v18  ;;  %v70_v23 = vxor.u32 %v68_v21, %v66_v19  ;;  %v53_v58 = vmul.u32 2221713035, %v51_v52  ;;  %v54_v33 = vmul.u32 2221713035, %v719_v63 }
  0x2a   :  { %v71_v24 = vmul.u32 2221713035, %v69_v22  ;;  %v72_v25 = vmul.u32 2221713035, %v70_v23  ;;  %v55_v5 = vshrl.u32 %v53_v58, 16  ;;  %v56_v52 = vshrl.u32 %v54_v33, 16 }
  0x2b   :  { %v678_v22 = vmov 1326507024  }
  0x2c   :  { %v73_v26 = vshrl.u32 %v71_v24, 16  ;;  %v74_v27 = vshrl.u32 %v72_v25, 16 }
  0x2e   :  { %v75_v29 = vxor.u32 %v73_v26, %v71_v24  ;;  %v76_v30 = vxor.u32 %v74_v27, %v72_v25 }
  0x30   :  { %v87_v31 = vshrl.u32 %v75_v29, 9  ;;  %v88_v32 = vshrl.u32 %v76_v30, 9 }
  0x32   :  { %v89_v34 = vor.u32 1065353216, %v87_v31  ;;  %v90_v35 = vor.u32 1065353216, %v88_v32 }
  0x34   :  { %v574_v36 = vadd.f32 -1.0, %v89_v34  ;;  %v575_v37 = vadd.f32 -1.0, %v90_v35 }
  0x36   :  { %v710_v40 = vmul.f32 6.2831855, %v574_v36  ;;  %v712_v41 = vmul.f32 6.2831855, %v575_v37  ;;  %v57_v37 = vxor.u32 %v55_v5, %v53_v58 }
  0x38   :  { %v120_v42 = vand.u32 2139095040, %v710_v40  ;;  %v223_v44 = vand.u32 2139095040, %v712_v41  ;;  %v117_v46 = vand.u32 2147483647, %v710_v40  ;;  %v220_v7 = vand.u32 2147483647, %v712_v41 }
  0x39   :  { %vm119_vm13 = vcmp.lt.s32.totalorder %v710_v40, 0 }
  0x3a   :  { %v121_v47 = vshrl.u32 %v120_v42, 23  ;;  %v224_v48 = vshrl.u32 %v223_v44, 23  ;;  %v124_v53 = vand.u32 8388607, %v117_v46  ;;  %v227_v42 = vand.u32 8388607, %v220_v7 }
  0x3b   :  { %vm772_vm14 = vcmp.le.f32.partialorder %v117_v46, 0.7853982 }
  0x3c   :  { %v576_v49 = vadd.s32 4294967169, %v121_v47  ;;  %v580_v51 = vadd.s32 4294967169, %v224_v48  ;;  %v125_v59 = vor.u32 8388608, %v124_v53 }
  0x3e   :  { %v127_v54 = vadd.s32 1, %v576_v49  ;;  %v230_v55 = vadd.s32 1, %v580_v51  ;;  %v721_v6 = vshll.u32 %v125_v59, 8 }
  0x40   :  { %vm128_vm0 = vcmp.gt.s32.totalorder %v127_v54, 0  ;;  %vm231_vm1 = vcmp.gt.s32.totalorder %v230_v55, 0 }
  0x41   :  { %v129_v57 = vsel %vm128_vm0, %v127_v54, 0  ;;  %v232_v61 = vsel %vm231_vm1, %v230_v55, 0  ;;  %vm222_vm0 = vcmp.lt.s32.totalorder %v712_v41, 0  ;;  %vm221_vm1 = vcmp.le.f32.partialorder %v220_v7, 0.7853982 }
  0x42   :  { %v131_v60 = vand.u32 31, %v129_v57  ;;  %v130_v0 = vshrl.u32 %v129_v57, 5  ;;  %v724_v8 = vand.u32 31, %v232_v61  ;;  %v228_v57 = vor.u32 8388608, %v227_v42 }
  0x43   :  { %v233_v58 = vshrl.u32 %v232_v61, 5 }
  0x44   :  { %v132_v62 = vsub.s32 32, %v131_v60  ;;  %v134_v2 = vshll.u32 %v673_v1, %v131_v60  ;;  %v137_v4 = vshll.u32 %v674_v3, %v131_v60  ;;  %v140_v13 = vshll.u32 %v675_v11, %v131_v60 }
  0x45   :  { %v143_v16 = vshll.u32 %v676_v14, %v131_v60  ;;  %v146_v19 = vshll.u32 %v677_v17, %v131_v60  ;;  %vm149_vm2 = vcmp.lt.s32.totalorder %v130_v0, 1  ;;  %vm150_vm3 = vcmp.lt.s32.totalorder %v130_v0, 2 }
  0x46   :  { %v133_v9 = vshrl.u32 %v673_v1, %v132_v62  ;;  %v135_v10 = vshrl.u32 %v674_v3, %v132_v62  ;;  %v138_v12 = vshrl.u32 %v675_v11, %v132_v62  ;;  %v141_v15 = vshrl.u32 %v676_v14, %v132_v62 }
  0x47   :  { %v144_v18 = vshrl.u32 %v677_v17, %v132_v62  ;;  %v147_v23 = vshrl.u32 %v678_v22, %v132_v62  ;;  %vm151_vm4 = vcmp.lt.s32.totalorder %v130_v0, 3  ;;  %vm152_vm5 = vcmp.lt.s32.totalorder %v130_v0, 4 }
  0x48   :  { %v136_v20 = vor.u32 %v135_v10, %v134_v2  ;;  %v139_v21 = vor.u32 %v138_v12, %v137_v4  ;;  %v142_v24 = vor.u32 %v141_v15, %v140_v13  ;;  %v235_v32 = vsub.s32 32, %v724_v8 }
  0x49   :  { %v145_v25 = vor.u32 %v144_v18, %v143_v16  ;;  %v148_v26 = vor.u32 %v147_v23, %v146_v19  ;;  %v237_v50 = vshll.u32 %v673_v1, %v724_v8  ;;  %v240_v53 = vshll.u32 %v674_v3, %v724_v8 }
  0x4a   :  { %v153_v27 = vsel %vm149_vm2, %v133_v9, %v136_v20  ;;  %v157_v28 = vsel %vm149_vm2, %v136_v20, %v139_v21  ;;  %v154_v29 = vsel %vm152_vm5, %v142_v24, 2102212464  ;;  %v161_v31 = vsel %vm149_vm2, %v139_v21, %v142_v24 }
  0x4b   :  { %v158_v30 = vsel %vm152_vm5, %v145_v25, 920167782  ;;  %v155_v34 = vsel %vm151_vm4, %v139_v21, %v154_v29  ;;  %v162_v36 = vsel %vm152_vm5, %v148_v26, 1326507024  ;;  %v238_v51 = vshrl.u32 %v674_v3, %v235_v32 }
  0x4c   :  { %v159_v35 = vsel %vm151_vm4, %v142_v24, %v158_v30  ;;  %v163_v39 = vsel %vm151_vm4, %v145_v25, %v162_v36  ;;  %v156_v43 = vsel %vm150_vm3, %v153_v27, %v155_v34  ;;  %v241_v54 = vshrl.u32 %v675_v11, %v235_v32 }
  0x4d   :  { %v160_v38 = vsel %vm150_vm3, %v157_v28, %v159_v35  ;;  %v164_v44 = vsel %vm150_vm3, %v161_v31, %v163_v39  ;;  %v243_v55 = vshll.u32 %v675_v11, %v724_v8  ;;  %v172_v56 = vmul.u32 %v721_v6, %v156_v43 }
  0x4e   :  { %v734_v45 = vmul.u32.u64.low %v721_v6, %v160_v38  ;;  %v735_v47 = vmul.u32.u64.high %v721_v6, %v160_v38, %v734_v45  ;;  %v739_v48 = vmul.u32.u64.low %v721_v6, %v164_v44  ;;  %v740_v49 = vmul.u32.u64.high %v721_v6, %v164_v44, %v739_v48 }
  0x4f   :  { %v244_v59 = vshrl.u32 %v676_v14, %v235_v32  ;;  %v77_v60 = vshrl.u32 %v57_v37, 9  ;;  %v236_v63 = vshrl.u32 %v673_v1, %v235_v32  ;;  %v246_v0 = vshll.u32 %v676_v14, %v724_v8 }
  0x50   :  { %v175_v62 = vadd.s32 1, %v735_v47  ;;  %vm174_vm6 = vc.u32 %v740_v49, %v734_v45  ;;  %v239_v2 = vor.u32 %v238_v51, %v237_v50  ;;  %v242_v4 = vor.u32 %v241_v54, %v240_v53 }
  0x51   :  { %v245_v3 = vor.u32 %v244_v59, %v243_v55  ;;  %v247_v9 = vshrl.u32 %v677_v17, %v235_v32  ;;  %v249_v6 = vshll.u32 %v677_v17, %v724_v8  ;;  %v250_v10 = vshrl.u32 %v678_v22, %v235_v32 }
  0x52   :  { %v176_v5 = vsel %vm174_vm6, %v175_v62, %v735_v47  ;;  %vm252_vm7 = vcmp.lt.s32.totalorder %v233_v58, 1  ;;  %vm253_vm8 = vcmp.lt.s32.totalorder %v233_v58, 2  ;;  %v268_v11 = vshll.u32 %v228_v57, 8 }
  0x53   :  { %v177_v61 = vadd.s32 %v176_v5, %v172_v56  ;;  %v248_v12 = vor.u32 %v247_v9, %v246_v0  ;;  %v251_v1 = vor.u32 %v250_v10, %v249_v6  ;;  %vm254_vm9 = vcmp.lt.s32.totalorder %v233_v58, 3 }
  0x54   :  { %vm255_vm10 = vcmp.lt.s32.totalorder %v233_v58, 4  ;;  %v260_v15 = vsel %vm252_vm7, %v239_v2, %v242_v4  ;;  %v264_v16 = vsel %vm252_vm7, %v242_v4, %v245_v3  ;;  %v58_v18 = vxor.u32 %v56_v52, %v54_v33 }
  0x55   :  { %v178_v13 = vadd.s32 536870912, %v177_v61  ;;  %v257_v14 = vsel %vm255_vm10, %v245_v3, 2102212464  ;;  %v256_v19 = vsel %vm252_vm7, %v236_v63, %v239_v2  ;;  %v261_v20 = vsel %vm255_vm10, %v248_v12, 920167782 }
  0x56   :  { %v265_v21 = vsel %vm255_vm10, %v251_v1, 1326507024  ;;  %v258_v8 = vsel %vm254_vm9, %v242_v4, %v257_v14  ;;  %v262_v17 = vsel %vm254_vm9, %v245_v3, %v261_v20  ;;  %v79_v26 = vor.u32 1065353216, %v77_v60 }
  0x57   :  { %v752_v23 = vshrl.u32 %v178_v13, 30  ;;  %v266_v22 = vsel %vm254_vm9, %v248_v12, %v265_v21  ;;  %v263_v24 = vsel %vm253_vm8, %v260_v15, %v262_v17  ;;  %v78_v30 = vshrl.u32 %v58_v18, 9 }
  0x58   :  { %v267_v25 = vsel %vm253_vm8, %v264_v16, %v266_v22  ;;  %v259_v31 = vsel %vm253_vm8, %v256_v19, %v258_v8  ;;  %v761_v32 = vmul.u32.u64.low %v268_v11, %v263_v24  ;;  %v762_v33 = vmul.u32.u64.high %v268_v11, %v263_v24, %v761_v32 }
  0x59   :  { %v180_v27 = vshll.u32 %v752_v23, 30  ;;  %v757_v28 = vmul.u32.u64.low %v268_v11, %v267_v25  ;;  %v758_v29 = vmul.u32.u64.high %v268_v11, %v267_v25, %v757_v28  ;;  %v572_v35 = vadd.f32 -1.0, %v79_v26 }
  0x5a   :  { %v275_v37 = vmul.u32 %v268_v11, %v259_v31  ;;  %v80_v38 = vor.u32 1065353216, %v78_v30  ;;  %v278_v39 = vadd.s32 1, %v762_v33  ;;  %v173_v53 = vadd.s32 %v734_v45, %v740_v49 }
  0x5b   :  { %v181_v34 = vsub.s32 %v177_v61, %v180_v27  ;;  %vm277_vm11 = vc.u32 %v758_v29, %v761_v32  ;;  %v85_v44 = vsub.f32 1.0, %v572_v35  ;;  %v276_v14 = vadd.s32 %v761_v32, %v758_v29 }
  0x5c   :  { %v279_v43 = vsel %vm277_vm11, %v278_v39, %v762_v33  ;;  %v573_v50 = vadd.f32 -1.0, %v80_v38  ;;  %v203_v16 = vsub.s32 4, %v752_v23  ;;  %vm209_vm10 = vweird.f32 %v710_v40 }
  0x5d   :  { %v183_v36 = vsub.s32 0, %v181_v34  ;;  %v280_v48 = vadd.s32 %v279_v43, %v275_v37  ;;  %608 = vlog2.f32 %v85_v44 }
  0x5e   :  { %v86_v55 = vsub.f32 1.0, %v573_v50  ;;  %v204_v26 = vsel %vm119_vm13, %v203_v16, %v752_v23 }
  0x5f   :  { %v577_v42 = vmin.u32 %v183_v36, %v181_v34  ;;  %v281_v52 = vadd.s32 536870912, %v280_v48  ;;  %v206_v30 = vsel %vm772_vm14, 0, %v204_v26  ;;  %v536_v26 = vld [vmem:[#allocation3 + $0x8] sm:$0xff] }
  0x60   :  { %610 = vlog2.f32 %v86_v55  ;;  %v418_v35 = vadd.s32 3, %v206_v30  ;;  %v210_v37 = vand.u32 3, %v206_v30 }
  0x61   :  { %v185_v47 = vclz %v577_v42  ;;  %v282_v54 = vshrl.u32 %v281_v52, 30 }
  0x62   :  { %v419_v43 = vand.u32 3, %v418_v35  ;;  %vm212_vm2 = vcmp.eq.s32.totalorder %v210_v37, 0  ;;  %vm215_vm3 = vcmp.eq.s32.totalorder %v210_v37, 2  ;;  %vm211_vm7 = vcmp.lt.s32.totalorder %v210_v37, 2 }
  0x63   :  { %v578_v51 = vadd.s32 4294967294, %v185_v47  ;;  %v283_v60 = vshll.u32 %v282_v54, 30 }
  0x64   :  { %vm421_vm4 = vcmp.eq.s32.totalorder %v419_v43, 0  ;;  %vm424_vm5 = vcmp.eq.s32.totalorder %v419_v43, 2  ;;  %vm420_vm8 = vcmp.lt.s32.totalorder %v419_v43, 2 }
  0x65   :  { %vm579_vm12 = vcmp.lt.s32.totalorder %v578_v51, 0  ;;  %v284_v0 = vsub.s32 %v280_v48, %v283_v60 }
  0x66   :  { %v188_v56 = vsel %vm579_vm12, 0, %v578_v51 }
  0x67   :  { %v189_v57 = vsub.s32 32, %v188_v56  ;;  %v190_v58 = vshll.u32 %v181_v34, %v188_v56  ;;  %v193_v59 = vsub.s32 4294967266, %v188_v56  ;;  %v286_v3 = vsub.s32 0, %v284_v0  ;;  %v609_v10 = vpop.eup %608 }
  0x68   :  { %v96_v12 = vmul.f32 0.6931472, %v609_v10  ;;  %v306_v34 = vsub.s32 4, %v282_v54 }
  0x69   :  { %v191_v62 = vshrl.u32 %v173_v53, %v189_v57  ;;  %v194_v63 = vadd.s32 127, %v193_v59  ;;  %v581_v6 = vmin.u32 %v286_v3, %v284_v0 }
  0x6a   :  { %v611_v15 = vpop.eup %610  ;;  %v99_v17 = vmul.f32 -2.0, %v96_v12  ;;  %v307_v39 = vsel %vm222_vm0, %v306_v34, %v282_v54 }
  0x6b   :  { %v192_v2 = vor.u32 %v191_v62, %v190_v58  ;;  %v195_v4 = vshll.u32 %v194_v63, 23  ;;  %v288_v49 = vclz %v581_v6  ;;  %v98_v22 = vmul.f32 0.6931472, %v611_v15 }
  0x6c   :  { %v309_v50 = vsel %vm221_vm1, 0, %v307_v39  ;;  %vm103_vm6 = vcmp.eq.f32.partialorder %v99_v17, inf  ;;  %v106_v59 = vand.u32 2147483648, %v99_v17  ;;  %vm105_vm9 = vcmp.eq.f32.partialorder %v99_v17, 0.0 }
  0x6d   :  { %v196_v5 = vor.u32 4788187, %v195_v4  ;;  %v199_v9 = vcvt.s32.f32 %v192_v2  ;;  %v582_v11 = vadd.s32 4294967294, %v288_v49  ;;  %v786_v29 = vmul.f32 -2.0, %v98_v22 }
  0x6e   :  { %v522_v55 = vadd.s32 3, %v309_v50  ;;  %v313_v62 = vand.u32 3, %v309_v50 }
  0x6f   :  { %v197_v45 = vand.u32 2147483647, %v196_v5  ;;  %vm583_vm15 = vcmp.lt.s32.totalorder %v582_v11, 0  ;;  %vm110_vm11 = vcmp.eq.f32.partialorder %v786_v29, inf  ;;  %vm112_vm12 = vcmp.eq.f32.partialorder %v786_v29, 0.0 }
  0x70   :  { %v291_v18 = vsel %vm583_vm15, 0, %v582_v11  ;;  %v523_v63 = vand.u32 3, %v522_v55  ;;  %v113_v5 = vand.u32 2147483648, %v786_v29  ;;  %vm315_vm15 = vcmp.eq.s32.totalorder %v313_v62, 0 }
  0x71   :  { %v200_v61 = vmul.f32 %v199_v9, %v197_v45  ;;  %v292_v20 = vsub.s32 32, %v291_v18  ;;  %v293_v21 = vshll.u32 %v284_v0, %v291_v18  ;;  %v296_v8 = vsub.s32 4294967266, %v291_v18 }
  0x73   :  { %v201_v13 = vxor.u32 2147483648, %v200_v61  ;;  %v294_v24 = vshrl.u32 %v276_v14, %v292_v20  ;;  %v297_v25 = vadd.s32 127, %v296_v8 }
  0x75   :  { %v202_v19 = vsel %vm119_vm13, %v201_v13, %v200_v61  ;;  %v295_v27 = vor.u32 %v294_v24, %v293_v21  ;;  %v298_v28 = vshll.u32 %v297_v25, 23  ;;  %vm318_vm13 = vcmp.eq.s32.totalorder %v313_v62, 2  ;;  %v535_v25 = vld [vmem:[#allocation3] sm:$0xff] }
  0x76   :  { %v205_v46 = vsel %vm772_vm14, %v710_v40, %v202_v19  ;;  %vm528_vm14 = vcmp.eq.s32.totalorder %v523_v63, 2 }
  0x77   :  { %612 = vcosq.f32 %v205_v46  ;;  %v299_v31 = vor.u32 4788187, %v298_v28  ;;  %v302_v32 = vcvt.s32.f32 %v295_v27 }
  0x78   :  { %614 = vsinq.f32 %v205_v46 }
  0x79   :  { %616 = vrsqrt.f32 %v99_v17  ;;  %v300_v33 = vand.u32 2147483647, %v299_v31 }
  0x7a   :  { %618 = vrsqrt.f32 %v786_v29 }
  0x7b   :  { %v303_v36 = vmul.f32 %v302_v32, %v300_v33 }
  0x7d   :  { %v304_v38 = vxor.u32 2147483648, %v303_v36 }
  0x7f   :  { %v305_v44 = vsel %vm222_vm0, %v304_v38, %v303_v36  ;;  %vm525_vm0 = vcmp.eq.s32.totalorder %v523_v63, 0 }
  0x80   :  { %v308_v48 = vsel %vm221_vm1, %v712_v41, %v305_v44  ;;  %vm312_vm1 = vweird.f32 %v712_v41 }
  0x81   :  { %v613_v23 = vpop.eup %612  ;;  %620 = vcosq.f32 %v308_v48 }
  0x82   :  { %v615_v42 = vpop.eup %614  ;;  %v216_v52 = vxor.u32 2147483648, %v613_v23  ;;  %622 = vsinq.f32 %v308_v48 }
  0x83   :  { %v617_v47 = vpop.eup %616  ;;  %v213_v51 = vxor.u32 2147483648, %v615_v42 }
  0x84   :  { %v102_v53 = vmul.f32 %v617_v47, %v99_v17  ;;  %v619_v7 = vpop.eup %618  ;;  %v217_v56 = vsel %vm215_vm3, %v216_v52, %v615_v42  ;;  %v426_v58 = vsel %vm424_vm5, %v216_v52, %v615_v42  ;;  %vm524_vm3 = vcmp.lt.s32.totalorder %v523_v63, 2 }
  0x85   :  { %v214_v54 = vsel %vm212_vm2, %v613_v23, %v213_v51  ;;  %v423_v57 = vsel %vm421_vm4, %v613_v23, %v213_v51  ;;  %v109_v0 = vmul.f32 %v619_v7, %v786_v29  ;;  %vm314_vm2 = vcmp.lt.s32.totalorder %v313_v62, 2 }
  0x86   :  { %v104_v60 = vsel %vm103_vm6, %v99_v17, %v102_v53  ;;  %v218_v2 = vsel %vm211_vm7, %v214_v54, %v217_v56  ;;  %v427_v4 = vsel %vm420_vm8, %v423_v57, %v426_v58 }
  0x87   :  { %v107_v3 = vsel %vm105_vm9, %v106_v59, %v104_v60  ;;  %v219_v6 = vsel %vm209_vm10, nan, %v218_v2  ;;  %v428_v10 = vsel %vm209_vm10, nan, %v427_v4  ;;  %v111_v49 = vsel %vm110_vm11, %v786_v29, %v109_v0 }
  0x88   :  { %v323_v12 = vmul.f32 %v219_v6, %v107_v3  ;;  %v533_v13 = vmul.f32 %v428_v10, %v107_v3  ;;  %v114_v14 = vsel %vm112_vm12, %v113_v5, %v111_v49 }
  0x8a   :  { %v537_v46 = vmul.f32 0.2, %v323_v12  ;;  %v547_v41 = vmul.f32 0.2, %v533_v13 }
  0x8b   :  { %v621_v9 = vpop.eup %620 }
  0x8c   :  { %v623_v45 = vpop.eup %622  ;;  %v319_v61 = vxor.u32 2147483648, %v621_v9 }
  0x8d   :  { %v316_v40 = vxor.u32 2147483648, %v623_v45 }
  0x8e   :  { %v320_v11 = vsel %vm318_vm13, %v319_v61, %v623_v45  ;;  %v530_v1 = vsel %vm528_vm14, %v319_v61, %v623_v45 }
  0x8f   :  { %v317_v15 = vsel %vm315_vm15, %v621_v9, %v316_v40  ;;  %v527_v16 = vsel %vm525_vm0, %v621_v9, %v316_v40 }
  0x90   :  { %v321_v18 = vsel %vm314_vm2, %v317_v15, %v320_v11  ;;  %v531_v19 = vsel %vm524_vm3, %v527_v16, %v530_v1 }
  0x91   :  { %v322_v20 = vsel %vm312_vm1, nan, %v321_v18  ;;  %v532_v21 = vsel %vm312_vm1, nan, %v531_v19 }
  0x92   :  { %v324_v8 = vmul.f32 %v322_v20, %v114_v14  ;;  %v534_v17 = vmul.f32 %v532_v21, %v114_v14 }
  0x94   :  { %v538_v22 = vmul.f32 0.2, %v324_v8  ;;  %v548_v24 = vmul.f32 0.2, %v534_v17 }
  0x96   :  { %v543_v27 = vcombine.low %v537_v46, %v538_v22  ;;  %v553_v28 = vcombine.low %v547_v41, %v548_v24 }
  0x98   :  { %v545_v29 = vadd.f32 %v543_v27, %v535_v25  ;;  %v555_v30 = vadd.f32 %v553_v28, %v536_v26 }
  0x9a   :  { %546 = vst [vmem:[#allocation6] sm:$0xff] %v545_v29  ;;  %556 = vst [vmem:[#allocation6 + $0x8] sm:$0xff] %v555_v30 }
  0x9b   :  { %657 = shalt.err (!%p654_p12)
}
  0x9c   :  { %s658_s27 = scalar_lea.hbm %s818_s2, 256 }
  0x9d   :  { %p659_p13 = scmp.ne.s32.totalorder %s818_s2, %s658_s27  ;;  %p662_p0 = scmp.lt.u32.totalorder %s658_s27, %s818_s2 }
  0x9f   :  { %p664_p1 = pnand %p662_p0, %p659_p13 }
  0xa1   :  { %667 = shalt.err (!%p664_p1)
}
  0xa2   :  { %566 = dma.vmem_to_hbm [thread:$0]  %s564_s1, 256, %s818_s2, [#allocation5]  }
  0xa3   :  { %670 = dma.done.wait [#allocation5], 256  }
  0xa4   :  { %671 = vsyncadd [#allocation5], 4294967040 }
  0xa5   :  { %570 = vsyncpa [#allocation4], 1 }
  0xa6   :  { %571 = vsyncpa [#allocation5], 1 }

</bundles_post_ra>
